<compile_context>
chip_gen: v5e
topology: v5e:2x2
jax: 0.10.0
libtpu: 0.0.40
codegen_flags: <defaults>
</compile_context>

<pallas_src>
import jax
import jax.numpy as jnp
from jax.experimental import pallas as pl
from jax.experimental.pallas import tpu as pltpu


def _sobel_kernel(x_ref, o_ref, pad_ref):
    """x_ref: (T, H, W) input block; o_ref: (T, H, W) output block;
    pad_ref: (T, H+2, W+2) VMEM halo scratch."""
    T, H, W = o_ref.shape

    # Re-zero the 1-pixel halo border every step (4 thin slice stores).
    # Doing it per step keeps the kernel correct no matter how the 'parallel'
    # grid axis is sharded across TensorCores (each core has its own scratch).
    pad_ref[:, 0:1, :] = jnp.zeros((T, 1, W + 2), jnp.float32)
    pad_ref[:, H + 1:H + 2, :] = jnp.zeros((T, 1, W + 2), jnp.float32)
    pad_ref[:, :, 0:1] = jnp.zeros((T, H + 2, 1), jnp.float32)
    pad_ref[:, :, W + 1:W + 2] = jnp.zeros((T, H + 2, 1), jnp.float32)

    # Place the unpadded tile in the interior of the halo scratch.
    pad_ref[:, 1:H + 1, 1:W + 1] = x_ref[...]
    xp = pad_ref[...]                                  # (T, H+2, W+2)

    left = xp[:, :, 0:W]
    mid = xp[:, :, 1:W + 1]
    right = xp[:, :, 2:W + 2]

    # Separable Sobel, horizontal pass ("x2" as an add: no f32 FMA on the VPU).
    s = left + (mid + mid) + right                     # [1, 2, 1] smooth
    d = right - left                                   # [-1, 0, 1] diff

    # Vertical pass (shifts along the sublane/row axis).
    d_top = d[:, 0:H]
    d_mid = d[:, 1:H + 1]
    d_bot = d[:, 2:H + 2]
    gx = d_top + (d_mid + d_mid) + d_bot               # [1, 2, 1] smooth of d
    gy = s[:, 0:H] - s[:, 2:H + 2]                     # [1, 0, -1] diff of s

    o_ref[...] = jnp.abs(gx) + jnp.abs(gy)


def _choose_block_n(n, h, w, vmem_budget_bytes):
    """Pick how many (H, W) channel-slices to process per grid step."""
    # Per-slice f32 VMEM footprint: double-buffered input block, double-
    # buffered output block, halo scratch, plus headroom for the separable
    # intermediates (s, d) the compiler keeps in VMEM when the tile exceeds
    # the vector registers.
    bytes_per_slice = 4 * (2 * h * w          # input (double buffered)
                           + 2 * h * w        # output (double buffered)
                           + (h + 2) * (w + 2)  # halo scratch
                           + 2 * h * w)       # compiler temporaries (s, d)
    t = max(1, int(vmem_budget_bytes) // bytes_per_slice)
    if t >= n:
        # Whole problem fits in one step.  Only split it for the second
        # TensorCore (v7x megacore) when each half is still a sizeable block
        # (>= ~1 MiB of input) so per-step pipeline overhead stays amortized.
        if n >= 2 and (n // 2) * h * w * 4 >= (1 << 20):
            return pl.cdiv(n, 2)
        return n
    # Largest block that fits the budget; a ragged trailing block is fine
    # (out-of-bounds writes of the last block are masked by Pallas).
    return min(t, n)


def sobelxy(x, *, vmem_budget_bytes=32 * 1024 * 1024):
    """x: (B, C, H, W) -> (B, C, 1, H, W) float32 (matches the PyTorch ref)."""
    B, C, H, W = x.shape
    N = B * C
    xf = x.astype(jnp.float32).reshape(N, H, W)

    block_n = _choose_block_n(N, H, W, vmem_budget_bytes)
    grid = (pl.cdiv(N, block_n),)

    # TODO(synk): add spatial (H, W) tiling with halo exchange for images too
    # large for a single (H, W) slice to fit in VMEM, and a lane-dense output
    # repack for W < 128 (stores are masked for the tiny demo shape).
    out = pl.pallas_call(
        _sobel_kernel,
        out_shape=jax.ShapeDtypeStruct((N, H, W), jnp.float32),
        grid_spec=pltpu.PrefetchScalarGridSpec(
            num_scalar_prefetch=0,
            grid=grid,
            in_specs=[pl.BlockSpec((block_n, H, W), lambda i: (i, 0, 0))],
            out_specs=pl.BlockSpec((block_n, H, W), lambda i: (i, 0, 0)),
            scratch_shapes=[pltpu.VMEM((block_n, H + 2, W + 2), jnp.float32)],
        ),
        compiler_params=pltpu.CompilerParams(
            dimension_semantics=("parallel",),
            vmem_limit_bytes=48 * 1024 * 1024,
        ),
    )(xf)

    # Reproduce the reference module's stack(dim=1)/cat(dim=0) output shape.
    return out.reshape(B, C, 1, H, W)


if __name__ == "__main__":
    key = jax.random.PRNGKey(0)
    B, C, H, W = 2, 4, 16, 16
    x = jax.random.normal(key, (B, C, H, W), dtype=jnp.float32)

    y = sobelxy(x)
    jax.block_until_ready(y)

    # Pure-JAX reference (direct 3x3 taps, same constants as the PyTorch module).
    kx = jnp.array([[-1., 0., 1.], [-2., 0., 2.], [-1., 0., 1.]], jnp.float32)
    ky = jnp.array([[1., 2., 1.], [0., 0., 0.], [-1., -2., -1.]], jnp.float32)
    xp = jnp.pad(x.reshape(B * C, H, W), ((0, 0), (1, 1), (1, 1)))
    gx = jnp.zeros((B * C, H, W), jnp.float32)
    gy = jnp.zeros((B * C, H, W), jnp.float32)
    for dy in range(3):
        for dx in range(3):
            win = xp[:, dy:dy + H, dx:dx + W]
            gx = gx + kx[dy, dx] * win
            gy = gy + ky[dy, dx] * win
    ref = (jnp.abs(gx) + jnp.abs(gy)).reshape(B, C, 1, H, W)

    assert y.shape == (B, C, 1, H, W), y.shape
    assert jnp.allclose(y, ref, atol=1e-4, rtol=1e-5), float(jnp.max(jnp.abs(y - ref)))
    print("KERNEL_OK")
</pallas_src>

<mosaic_0001>
module attributes {stable_mosaic.version = 11 : i64} {
  func.func @_sobel_kernel(%arg0: i32, %arg1: memref<8x16x16xf32, #tpu.memory_space<vmem>>, %arg2: memref<8x16x16xf32, #tpu.memory_space<vmem>>, %arg3: memref<8x18x18xf32, #tpu.memory_space<vmem>>) attributes {dimension_semantics = [#tpu.dimension_semantics<parallel>], iteration_bounds = array<i64: 1>, scalar_prefetch = 0 : i64, scratch_operands = 1 : i64, tpu.core_type = #tpu.core_type<tc>, window_params = [{transform_indices = @transform_0, window_bounds = array<i64: 8, 16, 16>}, {transform_indices = @transform_1, window_bounds = array<i64: 8, 16, 16>}]} {
    %cst = arith.constant 0.000000e+00 : f32
    %0 = vector.broadcast %cst : f32 to vector<8x1x18xf32>
    %c0 = arith.constant 0 : index
    %c0_0 = arith.constant 0 : index
    %c0_1 = arith.constant 0 : index
    %1 = vector.load %arg3[%c0, %c0_0, %c0_1] : memref<8x18x18xf32, #tpu.memory_space<vmem>>, vector<8x1x18xf32>
    tpu.vector_store %arg3[%c0, %c0_0, %c0_1], %0 {strides = array<i32>} : memref<8x18x18xf32, #tpu.memory_space<vmem>>, vector<8x1x18xf32>,
    %cst_2 = arith.constant 0.000000e+00 : f32
    %2 = vector.broadcast %cst_2 : f32 to vector<8x1x18xf32>
    %c0_3 = arith.constant 0 : index
    %c17 = arith.constant 17 : index
    %c0_4 = arith.constant 0 : index
    %3 = vector.load %arg3[%c0_3, %c17, %c0_4] : memref<8x18x18xf32, #tpu.memory_space<vmem>>, vector<8x1x18xf32>
    tpu.vector_store %arg3[%c0_3, %c17, %c0_4], %2 {strides = array<i32>} : memref<8x18x18xf32, #tpu.memory_space<vmem>>, vector<8x1x18xf32>,
    %cst_5 = arith.constant 0.000000e+00 : f32
    %4 = vector.broadcast %cst_5 : f32 to vector<8x18x1xf32>
    %c0_6 = arith.constant 0 : index
    %c0_7 = arith.constant 0 : index
    %c0_8 = arith.constant 0 : index
    %5 = vector.load %arg3[%c0_6, %c0_7, %c0_8] : memref<8x18x18xf32, #tpu.memory_space<vmem>>, vector<8x18x1xf32>
    tpu.vector_store %arg3[%c0_6, %c0_7, %c0_8], %4 {strides = array<i32>} : memref<8x18x18xf32, #tpu.memory_space<vmem>>, vector<8x18x1xf32>,
    %cst_9 = arith.constant 0.000000e+00 : f32
    %6 = vector.broadcast %cst_9 : f32 to vector<8x18x1xf32>
    %c0_10 = arith.constant 0 : index
    %c0_11 = arith.constant 0 : index
    %c17_12 = arith.constant 17 : index
    %7 = vector.load %arg3[%c0_10, %c0_11, %c17_12] : memref<8x18x18xf32, #tpu.memory_space<vmem>>, vector<8x18x1xf32>
    tpu.vector_store %arg3[%c0_10, %c0_11, %c17_12], %6 {strides = array<i32>} : memref<8x18x18xf32, #tpu.memory_space<vmem>>, vector<8x18x1xf32>,
    %c0_13 = arith.constant 0 : index
    %c0_14 = arith.constant 0 : index
    %c0_15 = arith.constant 0 : index
    %8 = vector.load %arg1[%c0_13, %c0_14, %c0_15] : memref<8x16x16xf32, #tpu.memory_space<vmem>>, vector<8x16x16xf32>
    %c0_16 = arith.constant 0 : index
    %c1 = arith.constant 1 : index
    %c1_17 = arith.constant 1 : index
    %9 = vector.load %arg3[%c0_16, %c1, %c1_17] : memref<8x18x18xf32, #tpu.memory_space<vmem>>, vector<8x16x16xf32>
    tpu.vector_store %arg3[%c0_16, %c1, %c1_17], %8 {strides = array<i32>} : memref<8x18x18xf32, #tpu.memory_space<vmem>>, vector<8x16x16xf32>,
    %c0_18 = arith.constant 0 : index
    %c0_19 = arith.constant 0 : index
    %c0_20 = arith.constant 0 : index
    %10 = vector.load %arg3[%c0_18, %c0_19, %c0_20] : memref<8x18x18xf32, #tpu.memory_space<vmem>>, vector<8x18x18xf32>
    %11 = vector.extract_strided_slice %10 {offsets = [0, 0, 0], sizes = [8, 18, 16], strides = [1, 1, 1]} : vector<8x18x18xf32> to vector<8x18x16xf32>
    %12 = vector.extract_strided_slice %10 {offsets = [0, 0, 1], sizes = [8, 18, 16], strides = [1, 1, 1]} : vector<8x18x18xf32> to vector<8x18x16xf32>
    %13 = vector.extract_strided_slice %10 {offsets = [0, 0, 2], sizes = [8, 18, 16], strides = [1, 1, 1]} : vector<8x18x18xf32> to vector<8x18x16xf32>
    %14 = arith.addf %12, %12 : vector<8x18x16xf32>
    %15 = arith.addf %11, %14 : vector<8x18x16xf32>
    %16 = arith.addf %15, %13 : vector<8x18x16xf32>
    %17 = arith.subf %13, %11 : vector<8x18x16xf32>
    %18 = vector.extract_strided_slice %17 {offsets = [0, 0, 0], sizes = [8, 16, 16], strides = [1, 1, 1]} : vector<8x18x16xf32> to vector<8x16x16xf32>
    %19 = vector.extract_strided_slice %17 {offsets = [0, 1, 0], sizes = [8, 16, 16], strides = [1, 1, 1]} : vector<8x18x16xf32> to vector<8x16x16xf32>
    %20 = vector.extract_strided_slice %17 {offsets = [0, 2, 0], sizes = [8, 16, 16], strides = [1, 1, 1]} : vector<8x18x16xf32> to vector<8x16x16xf32>
    %21 = arith.addf %19, %19 : vector<8x16x16xf32>
    %22 = arith.addf %18, %21 : vector<8x16x16xf32>
    %23 = arith.addf %22, %20 : vector<8x16x16xf32>
    %24 = vector.extract_strided_slice %16 {offsets = [0, 0, 0], sizes = [8, 16, 16], strides = [1, 1, 1]} : vector<8x18x16xf32> to vector<8x16x16xf32>
    %25 = vector.extract_strided_slice %16 {offsets = [0, 2, 0], sizes = [8, 16, 16], strides = [1, 1, 1]} : vector<8x18x16xf32> to vector<8x16x16xf32>
    %26 = arith.subf %24, %25 : vector<8x16x16xf32>
    %27 = math.absf %23 : vector<8x16x16xf32>
    %28 = math.absf %26 : vector<8x16x16xf32>
    %29 = arith.addf %27, %28 : vector<8x16x16xf32>
    %c0_21 = arith.constant 0 : index
    %c0_22 = arith.constant 0 : index
    %c0_23 = arith.constant 0 : index
    %30 = vector.load %arg2[%c0_21, %c0_22, %c0_23] : memref<8x16x16xf32, #tpu.memory_space<vmem>>, vector<8x16x16xf32>
    tpu.vector_store %arg2[%c0_21, %c0_22, %c0_23], %29 {strides = array<i32>} : memref<8x16x16xf32, #tpu.memory_space<vmem>>, vector<8x16x16xf32>,
    return
  }
  func.func @transform_0(%arg0: i32) -> (i32, i32, i32) {
    %c0_i32 = arith.constant 0 : i32
    %c0_i32_0 = arith.constant 0 : i32
    %c0_i32_1 = arith.constant 0 : i32
    return %arg0, %c0_i32, %c0_i32_0 : i32, i32, i32
  }
  func.func @transform_1(%arg0: i32) -> (i32, i32, i32) {
    %c0_i32 = arith.constant 0 : i32
    %c0_i32_0 = arith.constant 0 : i32
    %c0_i32_1 = arith.constant 0 : i32
    return %arg0, %c0_i32, %c0_i32_0 : i32, i32, i32
  }
}

</mosaic_0001>

<bundles_post_ra>
// kernel: tpu_custom_call.1
= control target key start
LH: loop header
LB: loop body
LE: loop exit
PB: predicated region body
PF: predicated region fallthrough
CT: control target
= control target key end

     0   :  { %6 = vsyncpa [#allocation4], 0  ;;  %s1909_s0 = inlined_call_operand.hbm [shape: f32[8,16,16], index: 0, kind: input, shape index: {}]   ;;  %s1910_s1 = inlined_call_operand.hbm [shape: f32[8,16,16], index: 1, kind: output, shape index: {}]  }
   0x1   :  { %7 = vsyncpa [#allocation5], 0  ;;  %s12_s8 = sshll.u32 %s1909_s0, 4  ;;  %s1162_s9 = smov [#allocation3]   ;;  %s13_s8 = int_to_ptr.hbm [resolvable:$true] %s12_s8 }
   0x2   :  { %s14_s10 = sshll.u32 %s1162_s9, 4  ;;  %s1163_s11 = smov 128   ;;  %s15_s10 = int_to_ptr.vmem [resolvable:$true] %s14_s10 }
   0x3   :  { %s1164_s12 = smov 8  }
   0x4   :  { %20 = dma.hbm_to_vmem [thread:$0]  %s13_s8, 2048, %s15_s10, [#allocation4], %s1163_s11, %s1163_s11, %s1164_s12  }
   0x5   :  { %1158 = dma.done.wait [#allocation4], 2048  }
   0x6   :  { %1159 = vsyncadd [#allocation4], 4294965248  ;;  %v96_v0 = vld [vmem:[#allocation3 + $0x10] sm:$0xff]  ;;  %v94_v1 = vld [vmem:[#allocation3] sm:$0xff]  ;;  %s1165_s13 = smov 1   ;;  %vm25_vm0 = vcmask 139264  }
   0x7   :  { %130 = vrot.lane.b32.xlu1 %v96_v0, %s1165_s13  ;;  %126 = vrot.lane.b32.xlu0 %v94_v1, %s1165_s13  ;;  %v98_v2 = vld [vmem:[#allocation3 + $0x20] sm:$0xff]  ;;  %v97_v3 = vld [vmem:[#allocation3 + $0x18] sm:$0xff]  ;;  %v95_v4 = vld [vmem:[#allocation3 + $0x8] sm:$0xff]  ;;  %vm42_vm1 = vcmask 7168   ;;  %v1166_v6 = vmov 0.0   ;;  %vm68_vm2 = vcmask 146568  }
   0x8   :  { %134 = vrot.lane.b32.xlu2 %v98_v2, %s1165_s13  ;;  %v99_v5 = vld [vmem:[#allocation3 + $0x28] sm:$0xff]  ;;  %27 = vst.msk [vmem:[#allocation2 + $0x18] sm:$0x1] %vm25_vm0, %v1166_v6  ;;  %v101_v7 = vld [vmem:[#allocation3 + $0x38] sm:$0xff]  ;;  %v100_v8 = vld [vmem:[#allocation3 + $0x30] sm:$0xff]  ;;  %vm45_vm3 = vcmask 1024  }
   0x9   :  { %47 = vst.msk [vmem:[#allocation2 + $0x18] sm:$0xff] %vm42_vm1, %v1166_v6  ;;  %v102_v9 = vld [vmem:[#allocation3 + $0x40] sm:$0xff]  ;;  %v103_v10 = vld [vmem:[#allocation3 + $0x48] sm:$0xff]  ;;  %v104_v11 = vld [vmem:[#allocation3 + $0x50] sm:$0xff]  ;;  %vm71_vm4 = vcmask 140424   ;;  %vm174_vm5 = vcmask 138248  }
   0xa   :  { %48 = vst.msk [vmem:[#allocation2 + $0x20] sm:$0xff] %vm42_vm1, %v1166_v6  ;;  %v105_v12 = vld [vmem:[#allocation3 + $0x58] sm:$0xff]  ;;  %v107_v13 = vld [vmem:[#allocation3 + $0x68] sm:$0xff]  ;;  %v106_v14 = vld [vmem:[#allocation3 + $0x60] sm:$0xff]  ;;  %s1167_s0 = smov 126   ;;  %s1168_s14 = smov 127  }
   0xb   :  { %73 = vst.msk [vmem:[#allocation2 + $0x18] sm:$0xff] %vm68_vm2, %v1166_v6  ;;  %v108_v15 = vld [vmem:[#allocation3 + $0x70] sm:$0xff]  ;;  %v109_v16 = vld [vmem:[#allocation3 + $0x78] sm:$0xff]  ;;  %s1169_s15 = smov 2   ;;  %vm720_vm6 = vcmask 1045504   ;;  %vm623_vm7 = vcmask 1046528  }
   0xc   :  { %74 = vst.msk [vmem:[#allocation2 + $0x20] sm:$0xff] %vm68_vm2, %v1166_v6  ;;  %vm1065_vm8 = vcmask 130048   ;;  %s1170_s16 = smov [#allocation6]   ;;  %s1088_s20 = sshll.u32 %s1910_s1, 4  ;;  %s1089_s20 = int_to_ptr.hbm [resolvable:$true] %s1088_s20 }
   0xd   :  { %26 = vst.msk [vmem:[#allocation2] sm:$0x1] %vm25_vm0, %v1166_v6  ;;  %s1086_s17 = sshll.u32 %s1170_s16, 4  ;;  %s1087_s17 = int_to_ptr.vmem [resolvable:$true] %s1086_s17 }
   0xe   :  { %28 = vst.msk [vmem:[#allocation2 + $0x30] sm:$0x1] %vm25_vm0, %v1166_v6 }
   0xf   :  { %132 = vrot.lane.b32.xlu1 %v97_v3, %s1165_s13  ;;  %128 = vrot.lane.b32.xlu0 %v95_v4, %s1165_s13  ;;  %29 = vst.msk [vmem:[#allocation2 + $0x48] sm:$0x1] %vm25_vm0, %v1166_v6 }
  0x10   :  { %136 = vrot.lane.b32.xlu2 %v99_v5, %s1165_s13  ;;  %30 = vst.msk [vmem:[#allocation2 + $0x60] sm:$0x1] %vm25_vm0, %v1166_v6 }
  0x11   :  { %31 = vst.msk [vmem:[#allocation2 + $0x78] sm:$0x1] %vm25_vm0, %v1166_v6 }
  0x12   :  { %32 = vst.msk [vmem:[#allocation2 + $0x90] sm:$0x1] %vm25_vm0, %v1166_v6 }
  0x13   :  { %33 = vst.msk [vmem:[#allocation2 + $0xa8] sm:$0x1] %vm25_vm0, %v1166_v6 }
  0x14   :  { %34 = vst.msk [vmem:[#allocation2 + $0x11] sm:$0x1] %vm25_vm0, %v1166_v6 }
  0x15   :  { %35 = vst.msk [vmem:[#allocation2 + $0x29] sm:$0x1] %vm25_vm0, %v1166_v6 }
  0x16   :  { %36 = vst.msk [vmem:[#allocation2 + $0x41] sm:$0x1] %vm25_vm0, %v1166_v6 }
  0x17   :  { %140 = vrot.lane.b32.xlu1 %v101_v7, %s1165_s13  ;;  %138 = vrot.lane.b32.xlu0 %v100_v8, %s1165_s13  ;;  %37 = vst.msk [vmem:[#allocation2 + $0x59] sm:$0x1] %vm25_vm0, %v1166_v6 }
  0x18   :  { %142 = vrot.lane.b32.xlu2 %v102_v9, %s1165_s13  ;;  %38 = vst.msk [vmem:[#allocation2 + $0x71] sm:$0x1] %vm25_vm0, %v1166_v6 }
  0x19   :  { %39 = vst.msk [vmem:[#allocation2 + $0x89] sm:$0x1] %vm25_vm0, %v1166_v6 }
  0x1a   :  { %40 = vst.msk [vmem:[#allocation2 + $0xa1] sm:$0x1] %vm25_vm0, %v1166_v6 }
  0x1b   :  { %41 = vst.msk [vmem:[#allocation2 + $0xb9] sm:$0x1] %vm25_vm0, %v1166_v6 }
  0x1c   :  { %44 = vst.msk [vmem:[#allocation2 + $0x8] sm:$0xff] %vm42_vm1, %v1166_v6 }
  0x1d   :  { %51 = vst.msk [vmem:[#allocation2 + $0x38] sm:$0xff] %vm42_vm1, %v1166_v6 }
  0x1e   :  { %54 = vst.msk [vmem:[#allocation2 + $0x50] sm:$0xff] %vm42_vm1, %v1166_v6 }
  0x1f   :  { %144 = vrot.lane.b32.xlu0 %v103_v10, %s1165_s13  ;;  %146 = vrot.lane.b32.xlu1 %v104_v11, %s1165_s13  ;;  %57 = vst.msk [vmem:[#allocation2 + $0x68] sm:$0xff] %vm42_vm1, %v1166_v6 }
  0x20   :  { %148 = vrot.lane.b32.xlu2 %v105_v12, %s1165_s13  ;;  %60 = vst.msk [vmem:[#allocation2 + $0x80] sm:$0xff] %vm42_vm1, %v1166_v6 }
  0x21   :  { %63 = vst.msk [vmem:[#allocation2 + $0x98] sm:$0xff] %vm42_vm1, %v1166_v6 }
  0x22   :  { %66 = vst.msk [vmem:[#allocation2 + $0xb0] sm:$0xff] %vm42_vm1, %v1166_v6 }
  0x23   :  { %43 = vst.msk [vmem:[#allocation2] sm:$0xff] %vm42_vm1, %v1166_v6 }
  0x24   :  { %69 = vst.msk [vmem:[#allocation2] sm:$0xff] %vm68_vm2, %v1166_v6 }
  0x25   :  { %70 = vst.msk [vmem:[#allocation2 + $0x8] sm:$0xff] %vm68_vm2, %v1166_v6 }
  0x26   :  { %50 = vst.msk [vmem:[#allocation2 + $0x30] sm:$0xff] %vm42_vm1, %v1166_v6 }
  0x27   :  { %152 = vrot.lane.b32.xlu1 %v107_v13, %s1165_s13  ;;  %150 = vrot.lane.b32.xlu0 %v106_v14, %s1165_s13  ;;  %53 = vst.msk [vmem:[#allocation2 + $0x48] sm:$0xff] %vm42_vm1, %v1166_v6 }
  0x28   :  { %154 = vrot.lane.b32.xlu2 %v108_v15, %s1165_s13  ;;  %56 = vst.msk [vmem:[#allocation2 + $0x60] sm:$0xff] %vm42_vm1, %v1166_v6 }
  0x29   :  { %59 = vst.msk [vmem:[#allocation2 + $0x78] sm:$0xff] %vm42_vm1, %v1166_v6 }
  0x2a   :  { %62 = vst.msk [vmem:[#allocation2 + $0x90] sm:$0xff] %vm42_vm1, %v1166_v6 }
  0x2b   :  { %65 = vst.msk [vmem:[#allocation2 + $0xa8] sm:$0xff] %vm42_vm1, %v1166_v6 }
  0x2c   :  { %77 = vst.msk [vmem:[#allocation2 + $0x38] sm:$0xff] %vm68_vm2, %v1166_v6 }
  0x2d   :  { %80 = vst.msk [vmem:[#allocation2 + $0x50] sm:$0xff] %vm68_vm2, %v1166_v6 }
  0x2e   :  { %83 = vst.msk [vmem:[#allocation2 + $0x68] sm:$0xff] %vm68_vm2, %v1166_v6 }
  0x2f   :  { %156 = vrot.lane.b32.xlu0 %v109_v16, %s1165_s13  ;;  %86 = vst.msk [vmem:[#allocation2 + $0x80] sm:$0xff] %vm68_vm2, %v1166_v6 }
  0x30   :  { %89 = vst.msk [vmem:[#allocation2 + $0x98] sm:$0xff] %vm68_vm2, %v1166_v6 }
  0x31   :  { %92 = vst.msk [vmem:[#allocation2 + $0xb0] sm:$0xff] %vm68_vm2, %v1166_v6 }
  0x32   :  { %76 = vst.msk [vmem:[#allocation2 + $0x30] sm:$0xff] %vm68_vm2, %v1166_v6 }
  0x33   :  { %79 = vst.msk [vmem:[#allocation2 + $0x48] sm:$0xff] %vm68_vm2, %v1166_v6 }
  0x34   :  { %82 = vst.msk [vmem:[#allocation2 + $0x60] sm:$0xff] %vm68_vm2, %v1166_v6 }
  0x35   :  { %85 = vst.msk [vmem:[#allocation2 + $0x78] sm:$0xff] %vm68_vm2, %v1166_v6 }
  0x36   :  { %88 = vst.msk [vmem:[#allocation2 + $0x90] sm:$0xff] %vm68_vm2, %v1166_v6 }
  0x37   :  { %91 = vst.msk [vmem:[#allocation2 + $0xa8] sm:$0xff] %vm68_vm2, %v1166_v6 }
  0x38   :  { %49 = vst.msk [vmem:[#allocation2 + $0x28] sm:$0x3] %vm45_vm3, %v1166_v6 }
  0x39   :  { %75 = vst.msk [vmem:[#allocation2 + $0x28] sm:$0x3] %vm71_vm4, %v1166_v6 }
  0x3a   :  { %46 = vst.msk [vmem:[#allocation2 + $0x10] sm:$0x3] %vm45_vm3, %v1166_v6 }
  0x3b   :  { %52 = vst.msk [vmem:[#allocation2 + $0x40] sm:$0x3] %vm45_vm3, %v1166_v6 }
  0x3c   :  { %55 = vst.msk [vmem:[#allocation2 + $0x58] sm:$0x3] %vm45_vm3, %v1166_v6 }
  0x3d   :  { %58 = vst.msk [vmem:[#allocation2 + $0x70] sm:$0x3] %vm45_vm3, %v1166_v6 }
  0x3e   :  { %61 = vst.msk [vmem:[#allocation2 + $0x88] sm:$0x3] %vm45_vm3, %v1166_v6 }
  0x3f   :  { %64 = vst.msk [vmem:[#allocation2 + $0xa0] sm:$0x3] %vm45_vm3, %v1166_v6 }
  0x40   :  { %67 = vst.msk [vmem:[#allocation2 + $0xb8] sm:$0x3] %vm45_vm3, %v1166_v6 }
  0x41   :  { %72 = vst.msk [vmem:[#allocation2 + $0x10] sm:$0x3] %vm71_vm4, %v1166_v6 }
  0x42   :  { %78 = vst.msk [vmem:[#allocation2 + $0x40] sm:$0x3] %vm71_vm4, %v1166_v6 }
  0x43   :  { %81 = vst.msk [vmem:[#allocation2 + $0x58] sm:$0x3] %vm71_vm4, %v1166_v6 }
  0x44   :  { %84 = vst.msk [vmem:[#allocation2 + $0x70] sm:$0x3] %vm71_vm4, %v1166_v6 }
  0x45   :  { %87 = vst.msk [vmem:[#allocation2 + $0x88] sm:$0x3] %vm71_vm4, %v1166_v6 }
  0x46   :  { %90 = vst.msk [vmem:[#allocation2 + $0xa0] sm:$0x3] %vm71_vm4, %v1166_v6 }
  0x47   :  { %93 = vst.msk [vmem:[#allocation2 + $0xb8] sm:$0x3] %vm71_vm4, %v1166_v6 }
  0x62   :  { %v135_v17 = vpop.permute.xlu2 %134 }
  0x63   :  { %179 = vst.msk [vmem:[#allocation2 + $0x31] sm:$0xff] %vm174_vm5, %v135_v17 }
  0x6a   :  { %v137_v18 = vpop.permute.xlu2 %136  ;;  %v1349_v30 = vld [vmem:[#allocation2 + $0x30] sm:$0xff] }
  0x6b   :  { %180 = vst.msk [vmem:[#allocation2 + $0x39] sm:$0xff] %vm174_vm5, %v137_v18  ;;  %v221_v51 = vadd.f32 %v1349_v30, %v1349_v30 }
  0x72   :  { %v143_v32 = vpop.permute.xlu2 %142  ;;  %v1361_v34 = vld [vmem:[#allocation2 + $0x40] sm:$0x3]  ;;  %v1365_v36 = vld [vmem:[#allocation2 + $0x38] sm:$0xff] }
  0x73   :  { %183 = vst.msk [vmem:[#allocation2 + $0x61] sm:$0xff] %vm174_vm5, %v143_v32  ;;  %v223_v49 = vadd.f32 %v1361_v34, %v1361_v34  ;;  %v222_v54 = vadd.f32 %v1365_v36, %v1365_v36 }
  0x79   :  { %v131_v19 = vpop.permute.xlu1 %130  ;;  %v127_v20 = vpop.permute.xlu0 %126 }
  0x7a   :  { %177 = vst.msk [vmem:[#allocation2 + $0x19] sm:$0xff] %vm174_vm5, %v131_v19  ;;  %v149_v37 = vpop.permute.xlu2 %148  ;;  %v1420_v57 = vld [vmem:[#allocation2 + $0x60] sm:$0xff] }
  0x7b   :  { %175 = vst.msk [vmem:[#allocation2 + $0x1] sm:$0xff] %vm174_vm5, %v127_v20  ;;  %v227_v59 = vadd.f32 %v1420_v57, %v1420_v57 }
  0x7c   :  { %186 = vst.msk [vmem:[#allocation2 + $0x81] sm:$0xff] %vm174_vm5, %v149_v37 }
  0x81   :  { %v133_v21 = vpop.permute.xlu1 %132  ;;  %v129_v22 = vpop.permute.xlu0 %128  ;;  %v1333_v24 = vld [vmem:[#allocation2 + $0x18] sm:$0xff] }
  0x82   :  { %178 = vst.msk [vmem:[#allocation2 + $0x21] sm:$0xff] %vm174_vm5, %v133_v21  ;;  %v1328_v23 = vld [vmem:[#allocation2] sm:$0xff]  ;;  %v218_v46 = vadd.f32 %v1333_v24, %v1333_v24  ;;  %v155_v47 = vpop.permute.xlu2 %154 }
  0x83   :  { %176 = vst.msk [vmem:[#allocation2 + $0x9] sm:$0xff] %vm174_vm5, %v129_v22  ;;  %383 = vrot.lane.b32.xlu1 %v1328_v23, %s1167_s0  ;;  %v215_v41 = vadd.f32 %v1328_v23, %v1328_v23  ;;  %v1431_v61 = vld [vmem:[#allocation2 + $0x88] sm:$0x3] }
  0x84   :  { %189 = vst.msk [vmem:[#allocation2 + $0xa9] sm:$0xff] %vm174_vm5, %v155_v47  ;;  %v232_v0 = vadd.f32 %v1431_v61, %v1431_v61 }
  0x89   :  { %v141_v25 = vpop.permute.xlu1 %140  ;;  %v139_v26 = vpop.permute.xlu0 %138  ;;  %v1347_v29 = vld [vmem:[#allocation2 + $0x28] sm:$0x3]  ;;  %v1351_v31 = vld [vmem:[#allocation2 + $0x20] sm:$0xff] }
  0x8a   :  { %v1335_v27 = vld [vmem:[#allocation2 + $0x10] sm:$0x3]  ;;  %v1337_v28 = vld [vmem:[#allocation2 + $0x8] sm:$0xff]  ;;  %182 = vst.msk [vmem:[#allocation2 + $0x51] sm:$0xff] %vm174_vm5, %v141_v25  ;;  %v220_v44 = vadd.f32 %v1347_v29, %v1347_v29  ;;  %v219_v50 = vadd.f32 %v1351_v31, %v1351_v31 }
  0x8b   :  { %387 = vrot.lane.b32.xlu0 %v1335_v27, %s1167_s0  ;;  %385 = vrot.lane.b32.xlu2 %v1337_v28, %s1167_s0  ;;  %181 = vst.msk [vmem:[#allocation2 + $0x49] sm:$0xff] %vm174_vm5, %v139_v26  ;;  %v217_v39 = vadd.f32 %v1335_v27, %v1335_v27  ;;  %v216_v45 = vadd.f32 %v1337_v28, %v1337_v28  ;;  %v1463_v10 = vld [vmem:[#allocation2 + $0xa8] sm:$0xff] }
  0x8c   :  { %389 = vrot.lane.b32.xlu1 %v1333_v24, %s1167_s0  ;;  %v236_v13 = vadd.f32 %v1463_v10, %v1463_v10 }
  0x91   :  { %v145_v33 = vpop.permute.xlu0 %144  ;;  %v147_v38 = vpop.permute.xlu1 %146  ;;  %v1407_v52 = vld [vmem:[#allocation2 + $0x58] sm:$0x3] }
  0x92   :  { %184 = vst.msk [vmem:[#allocation2 + $0x69] sm:$0xff] %vm174_vm5, %v145_v33  ;;  %v1363_v35 = vld [vmem:[#allocation2 + $0x48] sm:$0xff]  ;;  %v1377_v40 = vld [vmem:[#allocation2 + $0x50] sm:$0xff]  ;;  %v226_v53 = vadd.f32 %v1407_v52, %v1407_v52 }
  0x93   :  { %393 = vrot.lane.b32.xlu0 %v1347_v29, %s1167_s0  ;;  %391 = vrot.lane.b32.xlu2 %v1351_v31, %s1167_s0  ;;  %185 = vst.msk [vmem:[#allocation2 + $0x79] sm:$0xff] %vm174_vm5, %v147_v38  ;;  %v224_v55 = vadd.f32 %v1363_v35, %v1363_v35  ;;  %v225_v60 = vadd.f32 %v1377_v40, %v1377_v40 }
  0x94   :  { %395 = vrot.lane.b32.xlu1 %v1349_v30, %s1167_s0 }
  0x99   :  { %v153_v42 = vpop.permute.xlu1 %152  ;;  %v151_v43 = vpop.permute.xlu0 %150  ;;  %v1418_v56 = vld [vmem:[#allocation2 + $0x70] sm:$0x3]  ;;  %v1435_v63 = vld [vmem:[#allocation2 + $0x68] sm:$0xff] }
  0x9a   :  { %188 = vst.msk [vmem:[#allocation2 + $0x99] sm:$0xff] %vm174_vm5, %v153_v42  ;;  %v229_v58 = vadd.f32 %v1418_v56, %v1418_v56  ;;  %v1433_v62 = vld [vmem:[#allocation2 + $0x78] sm:$0xff]  ;;  %v228_v2 = vadd.f32 %v1435_v63, %v1435_v63  ;;  %v1450_v5 = vld [vmem:[#allocation2 + $0x80] sm:$0xff] }
  0x9b   :  { %399 = vrot.lane.b32.xlu0 %v1361_v34, %s1167_s0  ;;  %397 = vrot.lane.b32.xlu2 %v1365_v36, %s1167_s0  ;;  %187 = vst.msk [vmem:[#allocation2 + $0x91] sm:$0xff] %vm174_vm5, %v151_v43  ;;  %v230_v1 = vadd.f32 %v1433_v62, %v1433_v62  ;;  %v231_v8 = vadd.f32 %v1450_v5, %v1450_v5 }
  0x9c   :  { %401 = vrot.lane.b32.xlu1 %v1363_v35, %s1167_s0 }
  0xa1   :  { %v157_v48 = vpop.permute.xlu0 %156  ;;  %v1446_v3 = vld [vmem:[#allocation2 + $0xa0] sm:$0x3] }
  0xa2   :  { %190 = vst.msk [vmem:[#allocation2 + $0xb1] sm:$0xff] %vm174_vm5, %v157_v48  ;;  %v1448_v4 = vld [vmem:[#allocation2 + $0x90] sm:$0xff]  ;;  %v235_v6 = vadd.f32 %v1446_v3, %v1446_v3  ;;  %v1465_v11 = vld [vmem:[#allocation2 + $0x98] sm:$0xff] }
  0xa3   :  { %267 = vrot.lane.b32.xlu0 %v217_v39, %s1168_s14  ;;  %403 = vrot.lane.b32.xlu2 %v1377_v40, %s1167_s0  ;;  %v233_v7 = vadd.f32 %v1448_v4, %v1448_v4  ;;  %v234_v14 = vadd.f32 %v1465_v11, %v1465_v11 }
  0xa4   :  { %263 = vrot.lane.b32.xlu1 %v215_v41, %s1168_s14 }
  0xa9   :  { %v1461_v9 = vld [vmem:[#allocation2 + $0xb8] sm:$0x3]  ;;  %v1476_v15 = vld [vmem:[#allocation2 + $0xb0] sm:$0xff] }
  0xaa   :  { %v238_v12 = vadd.f32 %v1461_v9, %v1461_v9  ;;  %v237_v16 = vadd.f32 %v1476_v15, %v1476_v15 }
  0xab   :  { %273 = vrot.lane.b32.xlu0 %v220_v44, %s1168_s14  ;;  %265 = vrot.lane.b32.xlu2 %v216_v45, %s1168_s14 }
  0xac   :  { %269 = vrot.lane.b32.xlu1 %v218_v46, %s1168_s14 }
  0xb3   :  { %279 = vrot.lane.b32.xlu0 %v223_v49, %s1168_s14  ;;  %271 = vrot.lane.b32.xlu2 %v219_v50, %s1168_s14 }
  0xb4   :  { %275 = vrot.lane.b32.xlu1 %v221_v51, %s1168_s14 }
  0xbb   :  { %285 = vrot.lane.b32.xlu0 %v226_v53, %s1168_s14  ;;  %277 = vrot.lane.b32.xlu2 %v222_v54, %s1168_s14 }
  0xbc   :  { %281 = vrot.lane.b32.xlu1 %v224_v55, %s1168_s14 }
  0xc3   :  { %291 = vrot.lane.b32.xlu0 %v229_v58, %s1168_s14  ;;  %283 = vrot.lane.b32.xlu2 %v225_v60, %s1168_s14 }
  0xc4   :  { %287 = vrot.lane.b32.xlu1 %v227_v59, %s1168_s14 }
  0xcb   :  { %297 = vrot.lane.b32.xlu0 %v232_v0, %s1168_s14  ;;  %289 = vrot.lane.b32.xlu2 %v228_v2, %s1168_s14 }
  0xcc   :  { %293 = vrot.lane.b32.xlu1 %v230_v1, %s1168_s14 }
  0xd3   :  { %303 = vrot.lane.b32.xlu0 %v235_v6, %s1168_s14  ;;  %295 = vrot.lane.b32.xlu2 %v231_v8, %s1168_s14 }
  0xd4   :  { %299 = vrot.lane.b32.xlu1 %v233_v7, %s1168_s14 }
  0xdb   :  { %309 = vrot.lane.b32.xlu0 %v238_v12, %s1168_s14  ;;  %301 = vrot.lane.b32.xlu2 %v234_v14, %s1168_s14 }
  0xdc   :  { %305 = vrot.lane.b32.xlu1 %v236_v13, %s1168_s14 }
  0xe3   :  { %405 = vrot.lane.b32.xlu0 %v1407_v52, %s1167_s0  ;;  %307 = vrot.lane.b32.xlu2 %v237_v16, %s1168_s14 }
  0xe4   :  { %407 = vrot.lane.b32.xlu1 %v1420_v57, %s1167_s0 }
  0xe5   :  { %v386_v17 = vpop.permute.xlu2 %385 }
  0xeb   :  { %411 = vrot.lane.b32.xlu0 %v1418_v56, %s1167_s0  ;;  %409 = vrot.lane.b32.xlu2 %v1435_v63, %s1167_s0 }
  0xec   :  { %413 = vrot.lane.b32.xlu1 %v1433_v62, %s1167_s0 }
  0xed   :  { %v392_v18 = vpop.permute.xlu2 %391 }
  0xf3   :  { %417 = vrot.lane.b32.xlu0 %v1431_v61, %s1167_s0  ;;  %415 = vrot.lane.b32.xlu2 %v1450_v5, %s1167_s0 }
  0xf4   :  { %419 = vrot.lane.b32.xlu1 %v1448_v4, %s1167_s0 }
  0xf5   :  { %v398_v19 = vpop.permute.xlu2 %397  ;;  %v384_v20 = vpop.permute.xlu1 %383 }
  0xfb   :  { %423 = vrot.lane.b32.xlu0 %v1446_v3, %s1167_s0  ;;  %421 = vrot.lane.b32.xlu2 %v1465_v11, %s1167_s0 }
  0xfc   :  { %425 = vrot.lane.b32.xlu1 %v1463_v10, %s1167_s0 }
  0xfd   :  { %v388_v21 = vpop.permute.xlu0 %387  ;;  %v1503_v22 = vpop.permute.xlu2 %403 }
  0xfe   :  { %v390_v25 = vpop.permute.xlu1 %389 }
 0x103   :  { %429 = vrot.lane.b32.xlu0 %v1461_v9, %s1167_s0  ;;  %427 = vrot.lane.b32.xlu2 %v1476_v15, %s1167_s0 }
 0x104   :  { %479 = vrot.lane.b32.xlu1 %v1328_v23, %s1169_s15 }
 0x105   :  { %v1511_v26 = vpop.permute.xlu0 %393  ;;  %v266_v32 = vpop.permute.xlu2 %265 }
 0x106   :  { %v396_v33 = vpop.permute.xlu1 %395  ;;  %v336_v41 = vadd.f32 %v266_v32, %v1337_v28 }
 0x108   :  { %v1530_v44 = vadd.f32 %v386_v17, %v336_v41 }
 0x10a   :  { %v818_v50 = vrot.slane %v1530_v44, 2 }
 0x10b   :  { %483 = vrot.lane.b32.xlu0 %v1335_v27, %s1169_s15  ;;  %481 = vrot.lane.b32.xlu2 %v1337_v28, %s1169_s15 }
 0x10c   :  { %485 = vrot.lane.b32.xlu1 %v1333_v24, %s1169_s15 }
 0x10d   :  { %v1519_v37 = vpop.permute.xlu0 %399  ;;  %v272_v38 = vpop.permute.xlu2 %271 }
 0x10e   :  { %v1521_v39 = vpop.permute.xlu1 %401  ;;  %v339_v53 = vadd.f32 %v272_v38, %v1351_v31 }
 0x110   :  { %v459_v6 = vadd.f32 %v392_v18, %v339_v53 }
 0x112   :  { %v823_v12 = vrot.slane %v459_v6, 2 }
 0x113   :  { %489 = vrot.lane.b32.xlu0 %v1347_v29, %s1169_s15  ;;  %487 = vrot.lane.b32.xlu2 %v1351_v31, %s1169_s15 }
 0x114   :  { %491 = vrot.lane.b32.xlu1 %v1349_v30, %s1169_s15 }
 0x115   :  { %v268_v42 = vpop.permute.xlu0 %267  ;;  %v278_v43 = vpop.permute.xlu2 %277 }
 0x116   :  { %v337_v45 = vadd.f32 %v268_v42, %v1335_v27  ;;  %v264_v46 = vpop.permute.xlu1 %263  ;;  %v342_v13 = vadd.f32 %v278_v43, %v1365_v36 }
 0x117   :  { %v335_v47 = vadd.f32 %v264_v46, %v1328_v23 }
 0x118   :  { %v457_v48 = vadd.f32 %v388_v21, %v337_v45 }
 0x119   :  { %v455_v49 = vadd.f32 %v384_v20, %v335_v47 }
 0x11a   :  { %v820_v51 = vrot.slane %v457_v48, 2 }
 0x11b   :  { %v817_v54 = vrot.slane %v455_v49, 2  ;;  %495 = vrot.lane.b32.xlu0 %v1361_v34, %s1169_s15  ;;  %493 = vrot.lane.b32.xlu2 %v1365_v36, %s1169_s15 }
 0x11c   :  { %497 = vrot.lane.b32.xlu1 %v1363_v35, %s1169_s15  ;;  %v1543_v55 = vsel %vm720_vm6, %v818_v50, %v820_v51 }
 0x11d   :  { %v274_v58 = vpop.permute.xlu0 %273  ;;  %v284_v59 = vpop.permute.xlu2 %283  ;;  %v819_v60 = vsel %vm720_vm6, %v817_v54, %v818_v50  ;;  %v874_v0 = vsub.f32 %v1530_v44, %v1543_v55 }
 0x11e   :  { %v270_v1 = vpop.permute.xlu1 %269  ;;  %v873_v2 = vsub.f32 %v455_v49, %v819_v60  ;;  %v340_v49 = vadd.f32 %v274_v58, %v1347_v29 }
 0x11f   :  { %v338_v7 = vadd.f32 %v270_v1, %v1333_v24 }
 0x120   :  { %v460_v50 = vadd.f32 %v1511_v26, %v340_v49  ;;  %v345_v26 = vadd.f32 %v284_v59, %v1377_v40 }
 0x121   :  { %v458_v8 = vadd.f32 %v390_v25, %v338_v7  ;;  %v462_v25 = vadd.f32 %v398_v19, %v342_v13  ;;  %v905_v7 = vand.u32 2147483647, %v873_v2 }
 0x122   :  { %v825_v60 = vrot.slane %v460_v50, 2 }
 0x123   :  { %v822_v14 = vrot.slane %v458_v8, 2  ;;  %501 = vrot.lane.b32.xlu0 %v1407_v52, %s1169_s15  ;;  %499 = vrot.lane.b32.xlu2 %v1377_v40, %s1169_s15  ;;  %v828_v41 = vrot.slane %v462_v25, 2 }
 0x124   :  { %503 = vrot.lane.b32.xlu1 %v1420_v57, %s1169_s15  ;;  %v826_v13 = vsel %vm720_vm6, %v823_v12, %v825_v60 }
 0x125   :  { %v280_v16 = vpop.permute.xlu0 %279  ;;  %v1556_v17 = vpop.permute.xlu2 %289  ;;  %v824_v18 = vsel %vm720_vm6, %v822_v14, %v823_v12  ;;  %v465_v14 = vadd.f32 %v1503_v22, %v345_v26  ;;  %v876_v2 = vsub.f32 %v459_v6, %v826_v13 }
 0x126   :  { %v276_v20 = vpop.permute.xlu1 %275  ;;  %v875_v21 = vsub.f32 %v458_v8, %v824_v18  ;;  %v343_v54 = vadd.f32 %v280_v16, %v1361_v34 }
 0x127   :  { %v341_v32 = vadd.f32 %v276_v20, %v1349_v30 }
 0x128   :  { %v463_v1 = vadd.f32 %v1519_v37, %v343_v54 }
 0x129   :  { %v461_v38 = vadd.f32 %v396_v33, %v341_v32  ;;  %v906_v32 = vand.u32 2147483647, %v874_v0 }
 0x12a   :  { %v830_v18 = vrot.slane %v463_v1, 2 }
 0x12b   :  { %v827_v42 = vrot.slane %v461_v38, 2  ;;  %507 = vrot.lane.b32.xlu0 %v1418_v56, %s1169_s15  ;;  %505 = vrot.lane.b32.xlu2 %v1435_v63, %s1169_s15 }
 0x12c   :  { %509 = vrot.lane.b32.xlu1 %v1433_v62, %s1169_s15 }
 0x12d   :  { %v286_v43 = vpop.permute.xlu0 %285  ;;  %v1566_v44 = vpop.permute.xlu2 %295  ;;  %v829_v45 = vsel %vm720_vm6, %v827_v42, %v828_v41  ;;  %v908_v42 = vand.u32 2147483647, %v876_v2 }
 0x12e   :  { %v282_v19 = vpop.permute.xlu1 %281  ;;  %v877_v46 = vsub.f32 %v461_v38, %v829_v45  ;;  %v907_v38 = vand.u32 2147483647, %v875_v21  ;;  %v831_v45 = vsel %vm720_vm6, %v828_v41, %v830_v18  ;;  %v348_v41 = vadd.f32 %v1556_v17, %v1435_v63 }
 0x12f   :  { %v344_v58 = vadd.f32 %v282_v19, %v1363_v35  ;;  %v878_v49 = vsub.f32 %v462_v25, %v831_v45  ;;  %v346_v60 = vadd.f32 %v286_v43, %v1407_v52 }
 0x130   :  { %v909_v21 = vand.u32 2147483647, %v877_v46 }
 0x131   :  { %v464_v8 = vadd.f32 %v1521_v39, %v344_v58  ;;  %v833_v39 = vrot.slane %v465_v14, 2  ;;  %v910_v0 = vand.u32 2147483647, %v878_v49 }
 0x133   :  { %513 = vrot.lane.b32.xlu0 %v1431_v61, %s1169_s15  ;;  %511 = vrot.lane.b32.xlu2 %v1450_v5, %s1169_s15  ;;  %v832_v20 = vrot.slane %v464_v8, 2 }
 0x134   :  { %515 = vrot.lane.b32.xlu1 %v1448_v4, %s1169_s15 }
 0x135   :  { %v1575_v33 = vpop.permute.xlu0 %291  ;;  %v1577_v47 = vpop.permute.xlu2 %301  ;;  %v834_v12 = vsel %vm720_vm6, %v832_v20, %v833_v39  ;;  %v351_v20 = vadd.f32 %v1566_v44, %v1450_v5 }
 0x136   :  { %v288_v48 = vpop.permute.xlu1 %287  ;;  %v879_v50 = vsub.f32 %v464_v8, %v834_v12 }
 0x137   :  { %v347_v58 = vadd.f32 %v288_v48, %v1420_v57  ;;  %v349_v48 = vadd.f32 %v1575_v33, %v1418_v56 }
 0x138   :  { %v911_v54 = vand.u32 2147483647, %v879_v50 }
 0x13b   :  { %519 = vrot.lane.b32.xlu0 %v1446_v3, %s1169_s15  ;;  %517 = vrot.lane.b32.xlu2 %v1465_v11, %s1169_s15 }
 0x13c   :  { %521 = vrot.lane.b32.xlu1 %v1463_v10, %s1169_s15 }
 0x13d   :  { %v1587_v51 = vpop.permute.xlu0 %297  ;;  %v1589_v53 = vpop.permute.xlu2 %307 }
 0x13e   :  { %v294_v55 = vpop.permute.xlu1 %293 }
 0x143   :  { %525 = vrot.lane.b32.xlu0 %v1461_v9, %s1169_s15  ;;  %523 = vrot.lane.b32.xlu2 %v1476_v15, %s1169_s15 }
 0x144   :  { %937 = vrot.lane.b32.xlu1 %v905_v7, %s1169_s15 }
 0x145   :  { %v1603_v16 = vpop.permute.xlu0 %303  ;;  %v410_v59 = vpop.permute.xlu2 %409 }
 0x146   :  { %v300_v37 = vpop.permute.xlu1 %299  ;;  %v468_v25 = vadd.f32 %v410_v59, %v348_v41 }
 0x148   :  { %v838_v18 = vrot.slane %v468_v25, 2 }
 0x14b   :  { %939 = vrot.lane.b32.xlu2 %v906_v32, %s1169_s15  ;;  %941 = vrot.lane.b32.xlu0 %v907_v38, %s1169_s15  ;;  %v350_v38 = vadd.f32 %v294_v55, %v1433_v62  ;;  %v354_v55 = vadd.f32 %v1577_v47, %v1465_v11 }
 0x14c   :  { %943 = vrot.lane.b32.xlu1 %v908_v42, %s1169_s15 }
 0x14d   :  { %v1610_v22 = vpop.permute.xlu0 %309  ;;  %v416_v19 = vpop.permute.xlu2 %415 }
 0x14e   :  { %v1612_v6 = vpop.permute.xlu1 %305  ;;  %v471_v42 = vadd.f32 %v416_v19, %v351_v20 }
 0x153   :  { %947 = vrot.lane.b32.xlu0 %v910_v0, %s1169_s15  ;;  %945 = vrot.lane.b32.xlu2 %v909_v21, %s1169_s15 }
 0x154   :  { %949 = vrot.lane.b32.xlu1 %v911_v54, %s1169_s15 }
 0x155   :  { %v406_v26 = vpop.permute.xlu0 %405  ;;  %v422_v1 = vpop.permute.xlu2 %421 }
 0x156   :  { %v466_v7 = vadd.f32 %v406_v26, %v346_v60  ;;  %v408_v8 = vpop.permute.xlu1 %407  ;;  %v352_v60 = vadd.f32 %v1587_v51, %v1431_v61  ;;  %v353_v26 = vadd.f32 %v300_v37, %v1448_v4  ;;  %v357_v37 = vadd.f32 %v1589_v53, %v1476_v15 }
 0x157   :  { %v467_v46 = vadd.f32 %v408_v8, %v347_v58 }
 0x158   :  { %v835_v13 = vrot.slane %v466_v7, 2  ;;  %v474_v7 = vadd.f32 %v422_v1, %v354_v55 }
 0x159   :  { %v837_v2 = vrot.slane %v467_v46, 2 }
 0x15a   :  { %v836_v17 = vsel %vm720_vm6, %v833_v39, %v835_v13 }
 0x15b   :  { %v839_v43 = vsel %vm720_vm6, %v837_v2, %v838_v18  ;;  %v880_v32 = vsub.f32 %v465_v14, %v836_v17  ;;  %v843_v14 = vrot.slane %v471_v42, 2 }
 0x15c   :  { %v881_v59 = vsub.f32 %v467_v46, %v839_v43 }
 0x15d   :  { %v412_v45 = vpop.permute.xlu0 %411  ;;  %v428_v12 = vpop.permute.xlu2 %427  ;;  %v912_v49 = vand.u32 2147483647, %v880_v32 }
 0x15e   :  { %v913_v50 = vand.u32 2147483647, %v881_v59  ;;  %v469_v0 = vadd.f32 %v412_v45, %v349_v48  ;;  %v414_v21 = vpop.permute.xlu1 %413  ;;  %v355_v48 = vadd.f32 %v1603_v16, %v1446_v3  ;;  %v477_v45 = vadd.f32 %v428_v12, %v357_v37 }
 0x15f   :  { %v470_v39 = vadd.f32 %v414_v21, %v350_v38  ;;  %951 = vrot.lane.b32.xlu2 %v912_v49, %s1169_s15  ;;  %v356_v38 = vadd.f32 %v1612_v6, %v1463_v10 }
 0x160   :  { %v840_v44 = vrot.slane %v469_v0, 2  ;;  %953 = vrot.lane.b32.xlu0 %v913_v50, %s1169_s15 }
 0x161   :  { %v842_v54 = vrot.slane %v470_v39, 2 }
 0x162   :  { %v841_v33 = vsel %vm720_vm6, %v838_v18, %v840_v44 }
 0x163   :  { %v844_v19 = vsel %vm720_vm6, %v842_v54, %v843_v14  ;;  %v882_v41 = vsub.f32 %v468_v25, %v841_v33  ;;  %v848_v25 = vrot.slane %v474_v7, 2  ;;  %v358_v33 = vadd.f32 %v1610_v22, %v1461_v9 }
 0x164   :  { %v883_v58 = vsub.f32 %v470_v39, %v844_v19 }
 0x165   :  { %v418_v8 = vpop.permute.xlu0 %417  ;;  %v482_v46 = vpop.permute.xlu2 %481  ;;  %v914_v13 = vand.u32 2147483647, %v882_v41 }
 0x166   :  { %v915_v2 = vand.u32 2147483647, %v883_v58  ;;  %v472_v17 = vadd.f32 %v418_v8, %v352_v60  ;;  %v420_v20 = vpop.permute.xlu1 %419 }
 0x167   :  { %v473_v18 = vadd.f32 %v420_v20, %v353_v26  ;;  %955 = vrot.lane.b32.xlu1 %v914_v13, %s1169_s15 }
 0x168   :  { %v845_v47 = vrot.slane %v472_v17, 2  ;;  %957 = vrot.lane.b32.xlu2 %v915_v2, %s1169_s15 }
 0x169   :  { %v847_v43 = vrot.slane %v473_v18, 2 }
 0x16a   :  { %v846_v51 = vsel %vm720_vm6, %v843_v14, %v845_v47 }
 0x16b   :  { %v849_v1 = vsel %vm720_vm6, %v847_v43, %v848_v25  ;;  %v884_v32 = vsub.f32 %v471_v42, %v846_v51  ;;  %v853_v42 = vrot.slane %v477_v45, 2 }
 0x16c   :  { %v885_v59 = vsub.f32 %v473_v18, %v849_v1 }
 0x16d   :  { %v424_v49 = vpop.permute.xlu0 %423  ;;  %v1647_v50 = vpop.permute.xlu2 %487  ;;  %v916_v0 = vand.u32 2147483647, %v884_v32 }
 0x16e   :  { %v917_v21 = vand.u32 2147483647, %v885_v59  ;;  %v475_v39 = vadd.f32 %v424_v49, %v355_v48  ;;  %v426_v44 = vpop.permute.xlu1 %425  ;;  %v552_v48 = vsub.f32 %v1337_v28, %v482_v46 }
 0x16f   :  { %v476_v14 = vadd.f32 %v426_v44, %v356_v38  ;;  %959 = vrot.lane.b32.xlu0 %v916_v0, %s1169_s15 }
 0x170   :  { %v850_v53 = vrot.slane %v475_v39, 2  ;;  %961 = vrot.lane.b32.xlu1 %v917_v21, %s1169_s15  ;;  %v576_v38 = vadd.f32 %v552_v48, %v552_v48 }
 0x171   :  { %v852_v16 = vrot.slane %v476_v14, 2 }
 0x172   :  { %v851_v54 = vsel %vm720_vm6, %v848_v25, %v850_v53  ;;  %v625_v44 = vrot.slane %v576_v38, 1 }
 0x173   :  { %v854_v6 = vsel %vm720_vm6, %v852_v16, %v853_v42  ;;  %v886_v12 = vsub.f32 %v474_v7, %v851_v54  ;;  %v722_v16 = vrot.slane %v552_v48, 2 }
 0x174   :  { %v887_v55 = vsub.f32 %v476_v14, %v854_v6 }
 0x175   :  { %v430_v19 = vpop.permute.xlu0 %429  ;;  %v494_v41 = vpop.permute.xlu2 %493  ;;  %v918_v60 = vand.u32 2147483647, %v886_v12 }
 0x176   :  { %v919_v58 = vand.u32 2147483647, %v887_v55  ;;  %v478_v26 = vadd.f32 %v430_v19, %v358_v33  ;;  %v480_v8 = vpop.permute.xlu1 %479 }
 0x177   :  { %963 = vrot.lane.b32.xlu2 %v918_v60, %s1169_s15  ;;  %v551_v14 = vsub.f32 %v1328_v23, %v480_v8  ;;  %v1698_v8 = vsub.f32 %v1351_v31, %v1647_v50 }
 0x178   :  { %v855_v13 = vrot.slane %v478_v26, 2  ;;  %965 = vrot.lane.b32.xlu0 %v919_v58, %s1169_s15 }
 0x179   :  { %v575_v54 = vadd.f32 %v551_v14, %v551_v14 }
 0x17a   :  { %v856_v2 = vsel %vm720_vm6, %v853_v42, %v855_v13 }
 0x17b   :  { %v888_v17 = vsub.f32 %v477_v45, %v856_v2 }
 0x17d   :  { %v484_v20 = vpop.permute.xlu0 %483  ;;  %v500_v7 = vpop.permute.xlu2 %499  ;;  %v920_v18 = vand.u32 2147483647, %v888_v17 }
 0x17e   :  { %v486_v47 = vpop.permute.xlu1 %485  ;;  %v553_v51 = vsub.f32 %v1335_v27, %v484_v20  ;;  %v1675_v27 = vsub.f32 %v1365_v36, %v494_v41  ;;  %v624_v41 = vrot.slane %v575_v54, 1  ;;  %v1701_v13 = vsub.f32 %v1377_v40, %v500_v7 }
 0x17f   :  { %967 = vrot.lane.b32.xlu1 %v920_v18, %s1169_s15  ;;  %v1688_v60 = vsub.f32 %v1333_v24, %v486_v47 }
 0x180   :  { %v577_v59 = vadd.f32 %v553_v51, %v553_v51  ;;  %v1681_v46 = vadd.f32 %v1675_v27, %v1675_v27  ;;  %v626_v40 = vsel %vm623_vm7, %v624_v41, %v625_v44 }
 0x181   :  { %v578_v18 = vadd.f32 %v1688_v60, %v1688_v60 }
 0x182   :  { %v627_v45 = vrot.slane %v577_v59, 1  ;;  %v635_v55 = vrot.slane %v1681_v46, 1 }
 0x184   :  { %v628_v28 = vsel %vm623_vm7, %v625_v44, %v627_v45  ;;  %v680_v45 = vadd.f32 %v626_v40, %v551_v14 }
 0x185   :  { %v490_v22 = vpop.permute.xlu0 %489  ;;  %v1659_v25 = vpop.permute.xlu2 %505  ;;  %v681_v42 = vadd.f32 %v628_v28, %v552_v48 }
 0x186   :  { %v492_v43 = vpop.permute.xlu1 %491  ;;  %v1704_v2 = vsub.f32 %v1347_v29, %v490_v22  ;;  %v579_v29 = vadd.f32 %v1698_v8, %v1698_v8  ;;  %v721_v22 = vrot.slane %v551_v14, 2 }
 0x187   :  { %v557_v49 = vsub.f32 %v1349_v30, %v492_v43  ;;  %v724_v30 = vrot.slane %v553_v51, 2  ;;  %v1720_v51 = vadd.f32 %v1701_v13, %v1701_v13 }
 0x188   :  { %v580_v48 = vadd.f32 %v1704_v2, %v1704_v2  ;;  %v630_v44 = vrot.slane %v579_v29, 1  ;;  %v723_v54 = vsel %vm720_vm6, %v721_v22, %v722_v16  ;;  %v729_v29 = vrot.slane %v1704_v2, 2 }
 0x189   :  { %v581_v53 = vadd.f32 %v557_v49, %v557_v49  ;;  %v725_v23 = vsel %vm720_vm6, %v722_v16, %v724_v30  ;;  %v731_v17 = vrot.slane %v557_v49, 2  ;;  %v640_v28 = vrot.slane %v1720_v51, 1 }
 0x18a   :  { %v778_v19 = vadd.f32 %v725_v23, %v681_v42  ;;  %v632_v30 = vrot.slane %v580_v48, 1  ;;  %v777_v14 = vadd.f32 %v723_v54, %v680_v45 }
 0x18b   :  { %v634_v6 = vrot.slane %v581_v53, 1 }
 0x18c   :  { %v890_v24 = vand.u32 2147483647, %v778_v19  ;;  %v889_v40 = vand.u32 2147483647, %v777_v14 }
 0x18d   :  { %v1662_v37 = vpop.permute.xlu0 %495  ;;  %v1664_v1 = vpop.permute.xlu2 %511  ;;  %v636_v26 = vsel %vm623_vm7, %v634_v6, %v635_v55 }
 0x18e   :  { %v1666_v32 = vpop.permute.xlu1 %497  ;;  %v684_v20 = vadd.f32 %v636_v26, %v557_v49  ;;  %v629_v49 = vrot.slane %v578_v18, 1  ;;  %v1738_v6 = vsub.f32 %v1450_v5, %v1664_v1  ;;  %v1742_v19 = vsub.f32 %v1361_v34, %v1662_v37 }
 0x18f   :  { %v727_v5 = vrot.slane %v1698_v8, 2  ;;  %v726_v1 = vrot.slane %v1688_v60, 2 }
 0x190   :  { %v631_v16 = vsel %vm623_vm7, %v629_v49, %v630_v44  ;;  %v1781_v49 = vsub.f32 %v1435_v63, %v1659_v25 }
 0x191   :  { %v728_v22 = vsel %vm720_vm6, %v726_v1, %v727_v5  ;;  %v747_v1 = vrot.slane %v1738_v6, 2 }
 0x195   :  { %v502_v0 = vpop.permute.xlu0 %501  ;;  %v1670_v21 = vpop.permute.xlu2 %517 }
 0x196   :  { %v1672_v39 = vpop.permute.xlu1 %503  ;;  %v1691_v58 = vsub.f32 %v1407_v52, %v502_v0  ;;  %v732_v52 = vrot.slane %v1675_v27, 2  ;;  %v1815_v46 = vsub.f32 %v1465_v11, %v1670_v21 }
 0x198   :  { %v586_v47 = vadd.f32 %v1691_v58, %v1691_v58  ;;  %v733_v59 = vsel %vm720_vm6, %v731_v17, %v732_v52  ;;  %v633_v17 = vsel %vm623_vm7, %v630_v44, %v632_v30 }
 0x199   :  { %v781_v38 = vadd.f32 %v733_v59, %v684_v20  ;;  %v1764_v20 = vadd.f32 %v1738_v6, %v1738_v6  ;;  %v683_v48 = vadd.f32 %v633_v17, %v1698_v8 }
 0x19a   :  { %v642_v0 = vrot.slane %v586_v47, 1  ;;  %v682_v47 = vadd.f32 %v631_v16, %v1688_v60  ;;  %v730_v16 = vsel %vm720_vm6, %v727_v5, %v729_v29 }
 0x19b   :  { %v893_v23 = vand.u32 2147483647, %v781_v38 }
 0x19c   :  { %v779_v2 = vadd.f32 %v728_v22, %v682_v47 }
 0x19d   :  { %v1683_v12 = vpop.permute.xlu0 %507  ;;  %v524_v33 = vpop.permute.xlu2 %523 }
 0x19e   :  { %v510_v36 = vpop.permute.xlu1 %509  ;;  %v1733_v42 = vsub.f32 %v1476_v15, %v524_v33  ;;  %v643_v15 = vsel %vm623_vm7, %v640_v28, %v642_v0  ;;  %v650_v0 = vrot.slane %v1764_v20, 1 }
 0x19f   :  { %v1729_v53 = vsub.f32 %v1433_v62, %v510_v36  ;;  %v1746_v62 = vsub.f32 %v1363_v35, %v1666_v32  ;;  %v739_v35 = vrot.slane %v1691_v58, 2  ;;  %v687_v18 = vadd.f32 %v643_v15, %v1701_v13 }
 0x1a0   :  { %v597_v32 = vadd.f32 %v1733_v42, %v1733_v42  ;;  %v583_v58 = vadd.f32 %v1742_v19, %v1742_v19 }
 0x1a1   :  { %v590_v34 = vadd.f32 %v1729_v53, %v1729_v53  ;;  %v736_v29 = vrot.slane %v1746_v62, 2 }
 0x1a2   :  { %v660_v59 = vrot.slane %v597_v32, 1  ;;  %v637_v30 = vrot.slane %v583_v58, 1 }
 0x1a4   :  { %v638_v47 = vsel %vm623_vm7, %v635_v55, %v637_v30  ;;  %v891_v55 = vand.u32 2147483647, %v779_v2 }
 0x1a5   :  { %v1711_v43 = vpop.permute.xlu0 %513  ;;  %v940_v31 = vpop.permute.xlu2 %939 }
 0x1a6   :  { %v986_v50 = vadd.f32 %v940_v31, %v890_v24  ;;  %v1716_v7 = vpop.permute.xlu1 %515  ;;  %v737_v24 = vrot.slane %v1701_v13, 2 }
 0x1a8   :  { %1019 = vrot.lane.b32.xlu0 %v986_v50, %s1167_s0  ;;  %v649_v50 = vrot.slane %v590_v34, 1  ;;  %v740_v60 = vsel %vm720_vm6, %v737_v24, %v739_v35  ;;  %v746_v35 = vrot.slane %v1729_v53, 2  ;;  %v738_v30 = vsel %vm720_vm6, %v736_v29, %v737_v24 }
 0x1a9   :  { %v784_v44 = vadd.f32 %v740_v60, %v687_v18  ;;  %v1832_v60 = vadd.f32 %v1815_v46, %v1815_v46 }
 0x1aa   :  { %v651_v63 = vsel %vm623_vm7, %v649_v50, %v650_v0 }
 0x1ab   :  { %v896_v17 = vand.u32 2147483647, %v784_v44 }
 0x1ad   :  { %v520_v36 = vpop.permute.xlu0 %519  ;;  %v946_v41 = vpop.permute.xlu2 %945 }
 0x1ae   :  { %v989_v37 = vadd.f32 %v946_v41, %v893_v23  ;;  %v522_v33 = vpop.permute.xlu1 %521  ;;  %v757_v23 = vrot.slane %v1733_v42, 2 }
 0x1af   :  { %v572_v26 = vsub.f32 %v1463_v10, %v522_v33  ;;  %v584_v10 = vadd.f32 %v1746_v62, %v1746_v62 }
 0x1b0   :  { %1025 = vrot.lane.b32.xlu0 %v989_v37, %s1167_s0  ;;  %v780_v37 = vadd.f32 %v730_v16, %v683_v48 }
 0x1b1   :  { %v596_v31 = vadd.f32 %v572_v26, %v572_v26  ;;  %v756_v45 = vrot.slane %v572_v26, 2  ;;  %v639_v54 = vrot.slane %v584_v10, 1  ;;  %v1809_v10 = vsub.f32 %v1420_v57, %v1672_v39 }
 0x1b2   :  { %v892_v51 = vand.u32 2147483647, %v780_v37  ;;  %v748_v57 = vsel %vm720_vm6, %v746_v35, %v747_v1  ;;  %v685_v39 = vadd.f32 %v638_v47, %v1675_v27  ;;  %v568_v47 = vsub.f32 %v1431_v61, %v1711_v43 }
 0x1b3   :  { %v659_v38 = vrot.slane %v596_v31, 1  ;;  %v758_v33 = vsel %vm720_vm6, %v756_v45, %v757_v23  ;;  %v641_v58 = vsel %vm623_vm7, %v639_v54, %v640_v28  ;;  %v587_v22 = vadd.f32 %v1809_v10, %v1809_v10 }
 0x1b4   :  { %v686_v11 = vadd.f32 %v641_v58, %v1746_v62  ;;  %v565_v54 = vsub.f32 %v1418_v56, %v1683_v12  ;;  %v592_v29 = vadd.f32 %v568_v47, %v568_v47 }
 0x1b5   :  { %v526_v8 = vpop.permute.xlu0 %525  ;;  %v661_v14 = vsel %vm623_vm7, %v659_v38, %v660_v59 }
 0x1b6   :  { %v574_v41 = vsub.f32 %v1461_v9, %v526_v8  ;;  %v938_v15 = vpop.permute.xlu1 %937  ;;  %v694_v25 = vadd.f32 %v661_v14, %v572_v26  ;;  %v1797_v9 = vsub.f32 %v1446_v3, %v520_v36  ;;  %v690_v26 = vadd.f32 %v651_v63, %v1729_v53 }
 0x1b7   :  { %v985_v34 = vadd.f32 %v938_v15, %v889_v40  ;;  %v734_v40 = vrot.slane %v1742_v19, 2  ;;  %v644_v8 = vrot.slane %v587_v22, 1  ;;  %v744_v61 = vrot.slane %v565_v54, 2 }
 0x1b8   :  { %v598_v32 = vadd.f32 %v574_v41, %v574_v41  ;;  %v1794_v18 = vadd.f32 %v758_v33, %v694_v25  ;;  %v759_v3 = vrot.slane %v574_v41, 2  ;;  %v595_v28 = vadd.f32 %v1797_v9, %v1797_v9 }
 0x1b9   :  { %1017 = vrot.lane.b32.xlu2 %v985_v34, %s1167_s0  ;;  %v952_v5 = vpop.permute.xlu2 %951  ;;  %v787_v50 = vadd.f32 %v748_v57, %v690_v26  ;;  %v735_v44 = vsel %vm720_vm6, %v732_v52, %v734_v40  ;;  %v783_v52 = vadd.f32 %v738_v30, %v686_v11  ;;  %v655_v41 = vrot.slane %v1832_v60, 1 }
 0x1ba   :  { %v662_v31 = vrot.slane %v598_v32, 1  ;;  %v992_v36 = vadd.f32 %v952_v5, %v896_v17  ;;  %v760_v45 = vsel %vm720_vm6, %v757_v23, %v759_v3  ;;  %v782_v62 = vadd.f32 %v735_v44, %v685_v39 }
 0x1bb   :  { %v657_v23 = vrot.slane %v595_v28, 1  ;;  %v899_v27 = vand.u32 2147483647, %v787_v50  ;;  %v589_v25 = vadd.f32 %v565_v54, %v565_v54  ;;  %v895_v24 = vand.u32 2147483647, %v783_v52 }
 0x1bc   :  { %1031 = vrot.lane.b32.xlu0 %v992_v36, %s1167_s0  ;;  %v663_v53 = vsel %vm623_vm7, %v660_v59, %v662_v31  ;;  %v894_v63 = vand.u32 2147483647, %v782_v62  ;;  %v754_v33 = vrot.slane %v1797_v9, 2  ;;  %v741_v32 = vrot.slane %v1809_v10, 2 }
 0x1bd   :  { %v942_v19 = vpop.permute.xlu0 %941  ;;  %v695_v21 = vadd.f32 %v663_v53, %v1733_v42  ;;  %v588_v42 = vadd.f32 %v1781_v49, %v1781_v49  ;;  %v658_v34 = vsel %vm623_vm7, %v655_v41, %v657_v23  ;;  %v752_v5 = vrot.slane %v1815_v46, 2 }
 0x1be   :  { %v987_v48 = vadd.f32 %v942_v19, %v891_v55  ;;  %v944_v38 = vpop.permute.xlu1 %943  ;;  %v693_v17 = vadd.f32 %v658_v34, %v1815_v46  ;;  %v647_v26 = vrot.slane %v589_v25, 1  ;;  %v742_v31 = vrot.slane %v1781_v49, 2 }
 0x1bf   :  { %v988_v59 = vadd.f32 %v944_v38, %v892_v51  ;;  %v1837_v2 = vadd.f32 %v760_v45, %v695_v21  ;;  %v645_v16 = vrot.slane %v588_v42, 1  ;;  %v569_v9 = vsub.f32 %v1448_v4, %v1716_v7 }
 0x1c0   :  { %1021 = vrot.lane.b32.xlu1 %v987_v48, %s1167_s0  ;;  %v755_v3 = vsel %vm720_vm6, %v752_v5, %v754_v33  ;;  %v743_v36 = vsel %vm720_vm6, %v741_v32, %v742_v31  ;;  %v745_v50 = vsel %vm720_vm6, %v742_v31, %v744_v61  ;;  %v749_v22 = vrot.slane %v568_v47, 2 }
 0x1c1   :  { %1023 = vrot.lane.b32.xlu2 %v988_v59, %s1167_s0  ;;  %v646_v37 = vsel %vm623_vm7, %v644_v8, %v645_v16  ;;  %v790_v40 = vadd.f32 %v755_v3, %v693_v17  ;;  %v648_v55 = vsel %vm623_vm7, %v645_v16, %v647_v26  ;;  %v593_v51 = vadd.f32 %v569_v9, %v569_v9 }
 0x1c2   :  { %v958_v14 = vpop.permute.xlu2 %957  ;;  %v688_v58 = vadd.f32 %v646_v37, %v1809_v10  ;;  %v689_v57 = vadd.f32 %v648_v55, %v1781_v49  ;;  %v652_v10 = vrot.slane %v592_v29, 1  ;;  %v751_v48 = vrot.slane %v569_v9, 2 }
 0x1c3   :  { %v995_v15 = vadd.f32 %v958_v14, %v899_v27  ;;  %v902_v43 = vand.u32 2147483647, %v790_v40  ;;  %v654_v28 = vrot.slane %v593_v51, 1  ;;  %v750_v42 = vsel %vm720_vm6, %v747_v1, %v749_v22 }
 0x1c4   :  { %v785_v46 = vadd.f32 %v743_v36, %v688_v58  ;;  %v786_v11 = vadd.f32 %v745_v50, %v689_v57  ;;  %v653_v21 = vsel %vm623_vm7, %v650_v0, %v652_v10  ;;  %v753_v20 = vsel %vm720_vm6, %v751_v48, %v752_v5 }
 0x1c5   :  { %1037 = vrot.lane.b32.xlu0 %v995_v15, %s1167_s0  ;;  %v948_v13 = vpop.permute.xlu0 %947  ;;  %v656_v49 = vsel %vm623_vm7, %v654_v28, %v655_v41  ;;  %v691_v45 = vadd.f32 %v653_v21, %v1738_v6  ;;  %v903_v6 = vand.u32 2147483647, %v1794_v18  ;;  %v904_v41 = vand.u32 2147483647, %v1837_v2 }
 0x1c6   :  { %v990_v56 = vadd.f32 %v948_v13, %v894_v63  ;;  %v950_v12 = vpop.permute.xlu1 %949  ;;  %v897_v39 = vand.u32 2147483647, %v785_v46  ;;  %v898_v38 = vand.u32 2147483647, %v786_v11  ;;  %v692_v59 = vadd.f32 %v656_v49, %v569_v9 }
 0x1c7   :  { %v991_v35 = vadd.f32 %v950_v12, %v895_v24  ;;  %v788_v62 = vadd.f32 %v750_v42, %v691_v45 }
 0x1c8   :  { %1027 = vrot.lane.b32.xlu1 %v990_v56, %s1167_s0  ;;  %v789_v0 = vadd.f32 %v753_v20, %v692_v59 }
 0x1c9   :  { %1029 = vrot.lane.b32.xlu2 %v991_v35, %s1167_s0  ;;  %v900_v30 = vand.u32 2147483647, %v788_v62 }
 0x1ca   :  { %v901_v23 = vand.u32 2147483647, %v789_v0 }
 0x1d1   :  { %v964_v53 = vpop.permute.xlu2 %963 }
 0x1d2   :  { %v954_v19 = vpop.permute.xlu0 %953  ;;  %v998_v4 = vadd.f32 %v964_v53, %v902_v43 }
 0x1d3   :  { %v993_v7 = vadd.f32 %v954_v19, %v897_v39 }
 0x1d4   :  { %1043 = vrot.lane.b32.xlu0 %v998_v4, %s1167_s0 }
 0x1d5   :  { %1033 = vrot.lane.b32.xlu1 %v993_v7, %s1167_s0 }
 0x1d9   :  { %v956_v60 = vpop.permute.xlu1 %955 }
 0x1da   :  { %v994_v44 = vadd.f32 %v956_v60, %v898_v38 }
 0x1dc   :  { %1035 = vrot.lane.b32.xlu2 %v994_v44, %s1167_s0 }
 0x1e1   :  { %v960_v54 = vpop.permute.xlu0 %959 }
 0x1e2   :  { %v996_v27 = vadd.f32 %v960_v54, %v900_v30  ;;  %v962_v52 = vpop.permute.xlu1 %961 }
 0x1e3   :  { %v997_v8 = vadd.f32 %v962_v52, %v901_v23 }
 0x1e4   :  { %1039 = vrot.lane.b32.xlu1 %v996_v27, %s1167_s0 }
 0x1e5   :  { %1041 = vrot.lane.b32.xlu2 %v997_v8, %s1167_s0 }
 0x1ea   :  { %v966_v14 = vpop.permute.xlu0 %965 }
 0x1eb   :  { %v999_v1 = vadd.f32 %v966_v14, %v903_v6 }
 0x1ed   :  { %1045 = vrot.lane.b32.xlu1 %v999_v1, %s1167_s0 }
 0x1f1   :  { %v968_v15 = vpop.permute.xlu1 %967 }
 0x1f2   :  { %v1000_v16 = vadd.f32 %v968_v15, %v904_v41 }
 0x1f4   :  { %1047 = vrot.lane.b32.xlu2 %v1000_v16, %s1167_s0 }
 0x213   :  { %v1018_v63 = vpop.permute.xlu2 %1017 }
 0x214   :  { %1066 = vst.msk [vmem:[#allocation6] sm:$0xff] %vm1065_vm8, %v1018_v63 }
 0x21a   :  { %v1020_v25 = vpop.permute.xlu0 %1019 }
 0x21b   :  { %1067 = vst.msk [vmem:[#allocation6 + $0x8] sm:$0xff] %vm1065_vm8, %v1020_v25  ;;  %v1024_v13 = vpop.permute.xlu2 %1023 }
 0x21c   :  { %1069 = vst.msk [vmem:[#allocation6 + $0x18] sm:$0xff] %vm1065_vm8, %v1024_v13 }
 0x222   :  { %v1026_v18 = vpop.permute.xlu0 %1025 }
 0x223   :  { %1070 = vst.msk [vmem:[#allocation6 + $0x20] sm:$0xff] %vm1065_vm8, %v1026_v18  ;;  %v1030_v24 = vpop.permute.xlu2 %1029 }
 0x224   :  { %1072 = vst.msk [vmem:[#allocation6 + $0x30] sm:$0xff] %vm1065_vm8, %v1030_v24 }
 0x22e   :  { %v1032_v2 = vpop.permute.xlu0 %1031 }
 0x22f   :  { %1073 = vst.msk [vmem:[#allocation6 + $0x38] sm:$0xff] %vm1065_vm8, %v1032_v2 }
 0x232   :  { %v1022_v34 = vpop.permute.xlu1 %1021 }
 0x233   :  { %1068 = vst.msk [vmem:[#allocation6 + $0x10] sm:$0xff] %vm1065_vm8, %v1022_v34 }
 0x236   :  { %v1036_v56 = vpop.permute.xlu2 %1035 }
 0x237   :  { %v1038_v12 = vpop.permute.xlu0 %1037  ;;  %1075 = vst.msk [vmem:[#allocation6 + $0x48] sm:$0xff] %vm1065_vm8, %v1036_v56 }
 0x238   :  { %1076 = vst.msk [vmem:[#allocation6 + $0x50] sm:$0xff] %vm1065_vm8, %v1038_v12 }
 0x23a   :  { %v1028_v37 = vpop.permute.xlu1 %1027 }
 0x23b   :  { %1071 = vst.msk [vmem:[#allocation6 + $0x28] sm:$0xff] %vm1065_vm8, %v1028_v37 }
 0x23f   :  { %v1042_v33 = vpop.permute.xlu2 %1041 }
 0x240   :  { %1078 = vst.msk [vmem:[#allocation6 + $0x60] sm:$0xff] %vm1065_vm8, %v1042_v33 }
 0x246   :  { %v1044_v35 = vpop.permute.xlu0 %1043 }
 0x247   :  { %1079 = vst.msk [vmem:[#allocation6 + $0x68] sm:$0xff] %vm1065_vm8, %v1044_v35  ;;  %v1034_v32 = vpop.permute.xlu1 %1033 }
 0x248   :  { %1074 = vst.msk [vmem:[#allocation6 + $0x40] sm:$0xff] %vm1065_vm8, %v1034_v32 }
 0x24e   :  { %v1048_v17 = vpop.permute.xlu2 %1047 }
 0x24f   :  { %1081 = vst.msk [vmem:[#allocation6 + $0x78] sm:$0xff] %vm1065_vm8, %v1048_v17 }
 0x256   :  { %v1040_v5 = vpop.permute.xlu1 %1039 }
 0x257   :  { %1077 = vst.msk [vmem:[#allocation6 + $0x58] sm:$0xff] %vm1065_vm8, %v1040_v5 }
 0x25f   :  { %v1046_v26 = vpop.permute.xlu1 %1045 }
 0x260   :  { %1080 = vst.msk [vmem:[#allocation6 + $0x70] sm:$0xff] %vm1065_vm8, %v1046_v26 }
 0x261   :  { %1094 = dma.vmem_to_hbm [thread:$0]  %s1087_s17, 2048, %s1089_s20, [#allocation5], %s1163_s11, %s1163_s11, %s1164_s12  }
 0x262   :  { %1160 = dma.done.wait [#allocation5], 2048  }
 0x263   :  { %1161 = vsyncadd [#allocation5], 4294965248 }
 0x264   :  { %1099 = vsyncpa [#allocation4], 1 }
 0x265   :  { %1100 = vsyncpa [#allocation5], 1 }

</bundles_post_ra>
